<compile_context>
chip_gen: v7x
topology: tpu7x:2x2x1
jax: 0.10.0
libtpu: 0.0.40
codegen_flags: <defaults>
</compile_context>

<pallas_src>
import jax
import jax.numpy as jnp
from jax.experimental import pallas as pl
from jax.experimental.pallas import tpu as pltpu


def _embed_gather_kernel(ids_ref, table_ref, out_ref):
    # ids_ref:   (Tr, pack) int32 -- `pack` consecutive ids per output row.
    # table_ref: (pack*vocab, pack*d) -- block-diagonal packed table, VMEM
    #            resident across all grid steps (constant index_map).
    # out_ref:   (Tr, pack*d) -- row r = concat(table[ids[r,0]], ..., table[ids[r,pack-1]])
    ids = ids_ref[...]
    tr, pack = ids.shape
    kdim = table_ref.shape[0]
    vocab = kdim // pack

    kiota = jax.lax.broadcasted_iota(jnp.int32, (tr, kdim), 1)
    hot = None
    for g in range(pack):  # static, tiny (pack <= 4 here)
        oh = (kiota == (ids[:, g:g + 1] + g * vocab)).astype(table_ref.dtype)
        hot = oh if hot is None else hot + oh

    # Column blocks of the packed table are disjoint, so every output element
    # receives exactly one nonzero contribution -> bit-exact gather.
    out_ref[...] = jnp.dot(
        hot, table_ref[...], preferred_element_type=jnp.float32
    ).astype(out_ref.dtype)


def _pack_table(table, pack):
    """Block-diagonal layout: group g occupies rows [g*vocab, (g+1)*vocab) and
    columns [g*d, (g+1)*d); zeros elsewhere."""
    if pack == 1:
        return table
    vocab, d = table.shape
    blocks = []
    for g in range(pack):
        blk = jnp.zeros((vocab, pack * d), table.dtype)
        blk = blk.at[:, g * d:(g + 1) * d].set(table)
        blocks.append(blk)
    return jnp.concatenate(blocks, axis=0)  # (pack*vocab, pack*d)


def embedding_lookup(ids, table, *, block_ids=1024, out_dtype=None,
                     min_pallas_ids=1024):
    """Pallas TPU embedding lookup: returns table[ids] with trailing embed dim."""
    orig_shape = ids.shape
    ids_flat = ids.reshape(-1).astype(jnp.int32)
    n = int(ids_flat.shape[0])
    vocab, d = table.shape
    if out_dtype is None:
        out_dtype = table.dtype

    # Small-n fallback: pallas_call launch/DMA-setup overhead dwarfs the work.
    if n == 0 or n < min_pallas_ids:
        return jnp.take(table, ids, axis=0).astype(out_dtype)

    # Lane-dense packing: `pack` embeddings per 128-lane output row.
    pack = (128 // d) if (0 < d < 128 and 128 % d == 0) else 1
    lane_w = pack * d
    row_quantum = 8 * pack  # ids per fully-populated group of 8 output sublanes

    # Large id tile (default 1024 ids/step) to amortize ~0.35 us per-step
    # overhead; keep it a multiple of row_quantum so sublanes stay dense.
    t = max(row_quantum, (min(block_ids, n) // row_quantum) * row_quantum)
    # v7x: give the 2 TensorCores at least 2 grid steps when there's enough work.
    if n <= t and n > row_quantum:
        half = (n + 1) // 2
        t = ((half + row_quantum - 1) // row_quantum) * row_quantum

    n_pad = ((n + t - 1) // t) * t
    ids_p = jnp.pad(ids_flat, (0, n_pad - n)).reshape(n_pad // pack, pack)

    table_packed = _pack_table(table, pack)  # (pack*vocab, lane_w)

    t_rows = t // pack
    n_rows = n_pad // pack
    grid = n_rows // t_rows

    out = pl.pallas_call(
        _embed_gather_kernel,
        out_shape=jax.ShapeDtypeStruct((n_rows, lane_w), out_dtype),
        grid_spec=pltpu.PrefetchScalarGridSpec(
            num_scalar_prefetch=0,
            grid=(grid,),
            in_specs=[
                # (t_rows, pack) tile of grouped ids for this block.
                pl.BlockSpec((t_rows, pack), lambda i: (i, 0)),
                # Whole packed table, resident in VMEM across all steps.
                pl.BlockSpec((pack * vocab, lane_w), lambda i: (0, 0)),
            ],
            out_specs=pl.BlockSpec((t_rows, lane_w), lambda i: (i, 0)),
        ),
        compiler_params=pltpu.CompilerParams(
            # Independent id blocks: lets v7x's 2 TensorCores split the batch.
            dimension_semantics=("parallel",)),
    )(ids_p, table_packed)

    # Row-major reshape un-packs the 4-per-row layout for free.
    out_flat = out.reshape(n_pad, d)[:n]
    return out_flat.reshape(orig_shape + (d,))


def init_params(key, paragraph_in_dim=128, paragraph_out_dim=32):
    # Matches init_weights(): uniform(-1/11.3, 1/11.3) on the embedding weight.
    initrange = 1.0 / 11.3
    table = jax.random.uniform(
        key, (paragraph_in_dim, paragraph_out_dim),
        dtype=jnp.float32, minval=-initrange, maxval=initrange)
    return table


if __name__ == "__main__":
    paragraph_in_dim = 128   # vocab size
    paragraph_out_dim = 32   # embedding dim

    key = jax.random.PRNGKey(0)
    k_table, k_small, k_large = jax.random.split(key, 3)

    table = init_params(k_table, paragraph_in_dim, paragraph_out_dim)

    # Small batch of user ids consistent with the module: (batch=2, seq=8).
    user_id = jax.random.randint(
        k_small, (2, 8), minval=0, maxval=paragraph_in_dim, dtype=jnp.int32)
    # Force the Pallas path (min_pallas_ids=0) so the kernel itself is exercised.
    user_feature = embedding_lookup(user_id, table, min_pallas_ids=0)
    user_feature = jax.block_until_ready(user_feature)

    ref = jnp.take(table, user_id, axis=0)
    assert user_feature.shape == user_id.shape + (paragraph_out_dim,)
    assert jnp.allclose(user_feature, ref, rtol=1e-5, atol=1e-6)

    # Larger batch: 4 x 1024-id grid steps, lane-dense (256, 128) output tiles.
    user_id_l = jax.random.randint(
        k_large, (16, 256), minval=0, maxval=paragraph_in_dim, dtype=jnp.int32)
    feat_l = jax.block_until_ready(embedding_lookup(user_id_l, table))
    ref_l = jnp.take(table, user_id_l, axis=0)
    assert feat_l.shape == user_id_l.shape + (paragraph_out_dim,)
    assert jnp.allclose(feat_l, ref_l, rtol=1e-5, atol=1e-6)

    print("KERNEL_OK")
</pallas_src>

<mosaic_0001>
module attributes {stable_mosaic.version = 11 : i64} {
  func.func @_embed_gather_kernel(%arg0: i32, %arg1: memref<8x4xi32, #tpu.memory_space<vmem>>, %arg2: memref<512x128xf32, #tpu.memory_space<vmem>>, %arg3: memref<8x128xf32, #tpu.memory_space<vmem>>) attributes {dimension_semantics = [#tpu.dimension_semantics<parallel>], iteration_bounds = array<i64: 1>, scalar_prefetch = 0 : i64, scratch_operands = 0 : i64, tpu.core_type = #tpu.core_type<tc>, window_params = [{transform_indices = @transform_0, window_bounds = array<i64: 8, 4>}, {pipeline_mode = #tpu.pipeline_mode<synchronous>, transform_indices = @transform_1, window_bounds = array<i64: 512, 128>}, {transform_indices = @transform_2, window_bounds = array<i64: 8, 128>}]} {
    %c0 = arith.constant 0 : index
    %c0_0 = arith.constant 0 : index
    %0 = vector.load %arg1[%c0, %c0_0] : memref<8x4xi32, #tpu.memory_space<vmem>>, vector<8x4xi32>
    %1 = tpu.iota {dimensions = array<i32: 1>} : vector<8x512xi32>
    %2 = vector.extract_strided_slice %0 {offsets = [0, 0], sizes = [8, 1], strides = [1, 1]} : vector<8x4xi32> to vector<8x1xi32>
    %c0_i32 = arith.constant 0 : i32
    %3 = vector.broadcast %c0_i32 : i32 to vector<8x1xi32>
    %4 = arith.addi %2, %3 : vector<8x1xi32>
    %5 = vector.broadcast %4 : vector<8x1xi32> to vector<8x512xi32>
    %6 = arith.cmpi eq, %1, %5 : vector<8x512xi32>
    %7 = arith.extui %6 : vector<8x512xi1> to vector<8x512xi32>
    %8 = arith.sitofp %7 : vector<8x512xi32> to vector<8x512xf32>
    %9 = vector.extract_strided_slice %0 {offsets = [0, 1], sizes = [8, 1], strides = [1, 1]} : vector<8x4xi32> to vector<8x1xi32>
    %c128_i32 = arith.constant 128 : i32
    %10 = vector.broadcast %c128_i32 : i32 to vector<8x1xi32>
    %11 = arith.addi %9, %10 : vector<8x1xi32>
    %12 = vector.broadcast %11 : vector<8x1xi32> to vector<8x512xi32>
    %13 = arith.cmpi eq, %1, %12 : vector<8x512xi32>
    %14 = arith.extui %13 : vector<8x512xi1> to vector<8x512xi32>
    %15 = arith.sitofp %14 : vector<8x512xi32> to vector<8x512xf32>
    %16 = arith.addf %8, %15 : vector<8x512xf32>
    %17 = vector.extract_strided_slice %0 {offsets = [0, 2], sizes = [8, 1], strides = [1, 1]} : vector<8x4xi32> to vector<8x1xi32>
    %c256_i32 = arith.constant 256 : i32
    %18 = vector.broadcast %c256_i32 : i32 to vector<8x1xi32>
    %19 = arith.addi %17, %18 : vector<8x1xi32>
    %20 = vector.broadcast %19 : vector<8x1xi32> to vector<8x512xi32>
    %21 = arith.cmpi eq, %1, %20 : vector<8x512xi32>
    %22 = arith.extui %21 : vector<8x512xi1> to vector<8x512xi32>
    %23 = arith.sitofp %22 : vector<8x512xi32> to vector<8x512xf32>
    %24 = arith.addf %16, %23 : vector<8x512xf32>
    %25 = vector.extract_strided_slice %0 {offsets = [0, 3], sizes = [8, 1], strides = [1, 1]} : vector<8x4xi32> to vector<8x1xi32>
    %c384_i32 = arith.constant 384 : i32
    %26 = vector.broadcast %c384_i32 : i32 to vector<8x1xi32>
    %27 = arith.addi %25, %26 : vector<8x1xi32>
    %28 = vector.broadcast %27 : vector<8x1xi32> to vector<8x512xi32>
    %29 = arith.cmpi eq, %1, %28 : vector<8x512xi32>
    %30 = arith.extui %29 : vector<8x512xi1> to vector<8x512xi32>
    %31 = arith.sitofp %30 : vector<8x512xi32> to vector<8x512xf32>
    %32 = arith.addf %24, %31 : vector<8x512xf32>
    %c0_1 = arith.constant 0 : index
    %c0_2 = arith.constant 0 : index
    %33 = vector.load %arg2[%c0_1, %c0_2] : memref<512x128xf32, #tpu.memory_space<vmem>>, vector<512x128xf32>
    %cst = arith.constant dense<0.000000e+00> : vector<8x128xf32>
    %34 = tpu.matmul %32, %33, %cst {dimension_numbers = #tpu.dot_dimension_numbers<[1], [0], [0], [1], [0, 0, 1, 1], [], []>} : vector<8x512xf32>, vector<512x128xf32>, vector<8x128xf32> -> vector<8x128xf32>
    %c0_3 = arith.constant 0 : index
    %c0_4 = arith.constant 0 : index
    %35 = vector.load %arg3[%c0_3, %c0_4] : memref<8x128xf32, #tpu.memory_space<vmem>>, vector<8x128xf32>
    tpu.vector_store %arg3[%c0_3, %c0_4], %34 {strides = array<i32>} : memref<8x128xf32, #tpu.memory_space<vmem>>, vector<8x128xf32>,
    return
  }
  func.func @transform_0(%arg0: i32) -> (i32, i32) {
    %c0_i32 = arith.constant 0 : i32
    %c0_i32_0 = arith.constant 0 : i32
    return %arg0, %c0_i32 : i32, i32
  }
  func.func @transform_1(%arg0: i32) -> (i32, i32) {
    %c0_i32 = arith.constant 0 : i32
    %c0_i32_0 = arith.constant 0 : i32
    %c0_i32_1 = arith.constant 0 : i32
    return %c0_i32, %c0_i32_0 : i32, i32
  }
  func.func @transform_2(%arg0: i32) -> (i32, i32) {
    %c0_i32 = arith.constant 0 : i32
    %c0_i32_0 = arith.constant 0 : i32
    return %arg0, %c0_i32 : i32, i32
  }
}

</mosaic_0001>

<bundles_post_ra>
// kernel: tpu_custom_call.1
= control target key start
LH: loop header
LB: loop body
LE: loop exit
PB: predicated region body
PF: predicated region fallthrough
CT: control target
= control target key end

     0   :  { %7 = vsyncpa [#allocation3], 0  ;;  %s591_s0 = inlined_call_operand.vmem [shape: s32[8,4], index: 0, kind: input, shape index: {}]   ;;  %s592_s1 = inlined_call_operand.hbm [shape: f32[512,128], index: 1, kind: input, shape index: {}]   ;;  %s593_s2 = inlined_call_operand.hbm [shape: f32[8,128], index: 2, kind: output, shape index: {}]  }
   0x1   :  { %8 = vsyncpa [#allocation4], 0  ;;  %s539_s9 = smov [#allocation2]   ;;  %s491_s13 = scalar_lea.hbm %s592_s1, 8192 }
   0x2   :  { %s16_s10 = sshll.u32 %s539_s9, 4  ;;  %p492_p0 = scmp.ne.s32.totalorder %s592_s1, %s491_s13  ;;  %s17_s10 = int_to_ptr.vmem [resolvable:$true] %s16_s10 }
   0x3   :  { %p495_p1 = scmp.lt.u32.totalorder %s491_s13, %s592_s1 }
   0x5   :  { %p497_p2 = pnand %p495_p1, %p492_p0 }
   0x7   :  { %500 = shalt.err (!%p497_p2)
}
   0x8   :  { %s501_s18 = scalar_lea.vmem %s17_s10, 8192  ;;  %p506_p4 = scmp.lt.s32.totalorder %s17_s10, %s17_s10 }
   0x9   :  { %p502_p3 = scmp.ne.s32.totalorder %s17_s10, %s501_s18  ;;  %p507_p5 = scmp.lt.s32.totalorder %s501_s18, %s501_s18 }
   0xb   :  { %p508_p6 = por %p507_p5, %p506_p4 }
   0xd   :  { %p509_p7 = pnand %p508_p6, %p502_p3 }
   0xf   :  { %512 = shalt.err (!%p509_p7)
}
  0x10   :  { %s540_s19 = smov 128   ;;  %s541_s20 = smov 8  }
  0x11   :  { %22 = dma.hbm_to_vmem [thread:$0]  %s592_s1, 8192, %s17_s10, [#allocation3], %s540_s19, %s540_s19, %s541_s20  }
  0x12   :  { %535 = dma.done.wait [#allocation3], 8192  }
  0x13   :  { %536 = vsyncadd [#allocation3], 4294959104  ;;  %v542_v0 = vmov 0   ;;  %v543_v1 = vmov 2   ;;  %v26_v2 = vld [vmem:[%s591_s0] sm:$0xff]  ;;  %v124_v4 = vld [vmem:[#allocation2 + $0x88] sm:$0xff] }
  0x14   :  { %486 = vset.pattern.permute.xlu0 %v542_v0  ;;  %488 = vset.pattern.permute.xlu1 %v543_v1  ;;  %v123_v3 = vld [vmem:[#allocation2 + $0x80] sm:$0xff]  ;;  %v67_v5 = vadd.s32 256, %v26_v2  ;;  %v156_v8 = vld [vmem:[#allocation2 + $0x188] sm:$0xff]  ;;  %v47_v10 = vadd.s32 128, %v26_v2  ;;  %v125_v17 = vld [vmem:[#allocation2 + $0x90] sm:$0xff]  ;;  %v87_v20 = vadd.s32 384, %v26_v2 }
  0x15   :  { %33 = vperm.xlu0 %486, %v26_v2   ;;  %v413_v6 = vpack.c.bf16 %v124_v4, %v123_v3  ;;  %v155_v7 = vld [vmem:[#allocation2 + $0x180] sm:$0xff]  ;;  %v108_v12 = vld [vmem:[#allocation2 + $0x8] sm:$0xff]  ;;  %v126_v18 = vld [vmem:[#allocation2 + $0x98] sm:$0xff]  ;;  %v544_v25 = vmov 1   ;;  %v545_v35 = vmov 3   ;;  %s547_s0 = smov [#allocation5]  }
  0x16   :  { %v107_v9 = vld [vmem:[#allocation2] sm:$0xff]  ;;  %v445_v11 = vpack.c.bf16 %v156_v8, %v155_v7  ;;  %v140_v14 = vld [vmem:[#allocation2 + $0x108] sm:$0xff]  ;;  %69 = vperm.xlu1 %488, %v67_v5   ;;  %v157_v19 = vld [vmem:[#allocation2 + $0x190] sm:$0xff]  ;;  %v417_v21 = vpack.c.bf16 %v126_v18, %v125_v17  ;;  %s318_s1 = sshll.u32 %s547_s0, 4  ;;  %s319_s1 = int_to_ptr.vmem [resolvable:$true] %s318_s1 }
  0x17   :  { %v139_v13 = vld [vmem:[#allocation2 + $0x100] sm:$0xff]  ;;  %414 = vmatprep.subr.bf16.mxu0 %v413_v6  ;;  %v415_v15 = vpack.c.bf16 %v108_v12, %v107_v9  ;;  %v158_v22 = vld [vmem:[#allocation2 + $0x198] sm:$0xff]  ;;  %v109_v23 = vld [vmem:[#allocation2 + $0x10] sm:$0xff]  ;;  %s513_s25 = scalar_lea.vmem %s319_s1, 128  ;;  %p518_p9 = scmp.lt.s32.totalorder %s319_s1, %s319_s1 }
  0x18   :  { %v447_v16 = vpack.c.bf16 %v140_v14, %v139_v13  ;;  %446 = vmatprep.subr.bf16.mxu1 %v445_v11  ;;  %v110_v24 = vld [vmem:[#allocation2 + $0x18] sm:$0xff]  ;;  %v449_v26 = vpack.c.bf16 %v158_v22, %v157_v19  ;;  %v141_v28 = vld [vmem:[#allocation2 + $0x110] sm:$0xff]  ;;  %v127_v30 = vld [vmem:[#allocation2 + $0xa0] sm:$0xff]  ;;  %p514_p8 = scmp.ne.s32.totalorder %s319_s1, %s513_s25  ;;  %p519_p10 = scmp.lt.s32.totalorder %s513_s25, %s513_s25 }
  0x19   :  { %487 = vset.pattern.permute.xlu0 %v544_v25  ;;  %416 = vmatpush3.bf16.msra.mxu0 %v415_v15  ;;  %v419_v27 = vpack.c.bf16 %v110_v24, %v109_v23  ;;  %v142_v29 = vld [vmem:[#allocation2 + $0x118] sm:$0xff]  ;;  %v128_v32 = vld [vmem:[#allocation2 + $0xa8] sm:$0xff]  ;;  %v159_v33 = vld [vmem:[#allocation2 + $0x1a0] sm:$0xff] }
  0x1a   :  { %49 = vperm.xlu0 %487, %v47_v10   ;;  %448 = vmatpush3.bf16.msra.mxu1 %v447_v16  ;;  %v451_v31 = vpack.c.bf16 %v142_v29, %v141_v28  ;;  %v160_v34 = vld [vmem:[#allocation2 + $0x1a8] sm:$0xff]  ;;  %v421_v36 = vpack.c.bf16 %v128_v32, %v127_v30  ;;  %v111_v38 = vld [vmem:[#allocation2 + $0x20] sm:$0xff]  ;;  %v129_v42 = vld [vmem:[#allocation2 + $0xb0] sm:$0xff]  ;;  %p520_p11 = por %p519_p10, %p518_p9 }
  0x1b   :  { %489 = vset.pattern.permute.xlu1 %v545_v35  ;;  %418 = vmatprep.subr.bf16.mxu0 %v417_v21  ;;  %v453_v37 = vpack.c.bf16 %v160_v34, %v159_v33  ;;  %v112_v39 = vld [vmem:[#allocation2 + $0x28] sm:$0xff]  ;;  %v143_v40 = vld [vmem:[#allocation2 + $0x120] sm:$0xff]  ;;  %v130_v43 = vld [vmem:[#allocation2 + $0xb8] sm:$0xff] }
  0x1c   :  { %89 = vperm.xlu1 %489, %v87_v20   ;;  %450 = vmatprep.subr.bf16.mxu1 %v449_v26  ;;  %v144_v41 = vld [vmem:[#allocation2 + $0x128] sm:$0xff]  ;;  %v423_v44 = vpack.c.bf16 %v112_v39, %v111_v38  ;;  %v161_v45 = vld [vmem:[#allocation2 + $0x1b0] sm:$0xff]  ;;  %v162_v46 = vld [vmem:[#allocation2 + $0x1b8] sm:$0xff]  ;;  %v425_v48 = vpack.c.bf16 %v130_v43, %v129_v42  ;;  %p521_p12 = pnand %p520_p11, %p514_p8 }
  0x1d   :  { %420 = vmatpush3.bf16.msra.mxu0 %v419_v27  ;;  %v455_v47 = vpack.c.bf16 %v144_v41, %v143_v40  ;;  %v113_v49 = vld [vmem:[#allocation2 + $0x30] sm:$0xff]  ;;  %v114_v50 = vld [vmem:[#allocation2 + $0x38] sm:$0xff]  ;;  %v457_v52 = vpack.c.bf16 %v162_v46, %v161_v45  ;;  %v131_v54 = vld [vmem:[#allocation2 + $0xc0] sm:$0xff]  ;;  %v27_v40 = vlaneseq }
  0x1e   :  { %452 = vmatpush3.bf16.msra.mxu1 %v451_v31  ;;  %422 = vmatprep.subr.bf16.mxu0 %v421_v36  ;;  %v145_v51 = vld [vmem:[#allocation2 + $0x130] sm:$0xff]  ;;  %v146_v53 = vld [vmem:[#allocation2 + $0x138] sm:$0xff]  ;;  %v132_v55 = vld [vmem:[#allocation2 + $0xc8] sm:$0xff]  ;;  %v427_v58 = vpack.c.bf16 %v114_v50, %v113_v49 }
  0x1f   :  { %454 = vmatprep.subr.bf16.mxu1 %v453_v37  ;;  %490 = vset.pattern.permute.xlu0 %v545_v35  ;;  %v163_v56 = vld [vmem:[#allocation2 + $0x1c0] sm:$0xff]  ;;  %v164_v57 = vld [vmem:[#allocation2 + $0x1c8] sm:$0xff]  ;;  %v459_v59 = vpack.c.bf16 %v146_v53, %v145_v51  ;;  %v429_v60 = vpack.c.bf16 %v132_v55, %v131_v54  ;;  %v133_v2 = vld [vmem:[#allocation2 + $0xd0] sm:$0xff]  ;;  %v28_v41 = vand.u32 127, %v27_v40 }
  0x20   :  { %v115_v61 = vld [vmem:[#allocation2 + $0x40] sm:$0xff]  ;;  %v116_v62 = vld [vmem:[#allocation2 + $0x48] sm:$0xff]  ;;  %v461_v0 = vpack.c.bf16 %v164_v57, %v163_v56  ;;  %v134_v3 = vld [vmem:[#allocation2 + $0xd8] sm:$0xff] }
  0x21   :  { %424 = vmatpush3.bf16.msra.mxu0 %v423_v44  ;;  %v147_v63 = vld [vmem:[#allocation2 + $0x140] sm:$0xff]  ;;  %v148_v1 = vld [vmem:[#allocation2 + $0x148] sm:$0xff]  ;;  %v165_v4 = vld [vmem:[#allocation2 + $0x1d0] sm:$0xff]  ;;  %v431_v6 = vpack.c.bf16 %v116_v62, %v115_v61  ;;  %v433_v8 = vpack.c.bf16 %v134_v3, %v133_v2  ;;  %v29_v42 = vadd.s32 128, %v28_v41  ;;  %v30_v43 = vadd.s32 256, %v28_v41 }
  0x22   :  { %456 = vmatpush3.bf16.msra.mxu1 %v455_v47  ;;  %426 = vmatprep.subr.bf16.mxu0 %v425_v48  ;;  %v166_v5 = vld [vmem:[#allocation2 + $0x1d8] sm:$0xff]  ;;  %v463_v7 = vpack.c.bf16 %v148_v1, %v147_v63  ;;  %v117_v9 = vld [vmem:[#allocation2 + $0x50] sm:$0xff]  ;;  %v135_v14 = vld [vmem:[#allocation2 + $0xe0] sm:$0xff]  ;;  %v31_v44 = vadd.s32 384, %v28_v41  ;;  %v546_v47 = vmov 0.0  }
  0x23   :  { %458 = vmatprep.subr.bf16.mxu1 %v457_v52  ;;  %v118_v10 = vld [vmem:[#allocation2 + $0x58] sm:$0xff]  ;;  %v149_v11 = vld [vmem:[#allocation2 + $0x150] sm:$0xff]  ;;  %v465_v12 = vpack.c.bf16 %v166_v5, %v165_v4  ;;  %v136_v15 = vld [vmem:[#allocation2 + $0xe8] sm:$0xff] }
  0x24   :  { %v150_v13 = vld [vmem:[#allocation2 + $0x158] sm:$0xff]  ;;  %v167_v16 = vld [vmem:[#allocation2 + $0x1e0] sm:$0xff]  ;;  %v168_v17 = vld [vmem:[#allocation2 + $0x1e8] sm:$0xff]  ;;  %v435_v18 = vpack.c.bf16 %v118_v10, %v117_v9  ;;  %v437_v20 = vpack.c.bf16 %v136_v15, %v135_v14 }
  0x25   :  { %428 = vmatpush3.bf16.msra.mxu0 %v427_v58  ;;  %v467_v19 = vpack.c.bf16 %v150_v13, %v149_v11  ;;  %v119_v21 = vld [vmem:[#allocation2 + $0x60] sm:$0xff]  ;;  %v120_v22 = vld [vmem:[#allocation2 + $0x68] sm:$0xff]  ;;  %v469_v24 = vpack.c.bf16 %v168_v17, %v167_v16  ;;  %v137_v26 = vld [vmem:[#allocation2 + $0xf0] sm:$0xff] }
  0x26   :  { %460 = vmatpush3.bf16.msra.mxu1 %v459_v59  ;;  %430 = vmatprep.subr.bf16.mxu0 %v429_v60  ;;  %v151_v23 = vld [vmem:[#allocation2 + $0x160] sm:$0xff]  ;;  %v152_v25 = vld [vmem:[#allocation2 + $0x168] sm:$0xff]  ;;  %v138_v27 = vld [vmem:[#allocation2 + $0xf8] sm:$0xff]  ;;  %v439_v30 = vpack.c.bf16 %v120_v22, %v119_v21 }
  0x27   :  { %462 = vmatprep.subr.bf16.mxu1 %v461_v0  ;;  %v169_v28 = vld [vmem:[#allocation2 + $0x1f0] sm:$0xff]  ;;  %v170_v29 = vld [vmem:[#allocation2 + $0x1f8] sm:$0xff]  ;;  %v471_v31 = vpack.c.bf16 %v152_v25, %v151_v23  ;;  %v441_v32 = vpack.c.bf16 %v138_v27, %v137_v26 }
  0x28   :  { %v121_v33 = vld [vmem:[#allocation2 + $0x70] sm:$0xff]  ;;  %v122_v34 = vld [vmem:[#allocation2 + $0x78] sm:$0xff]  ;;  %v473_v35 = vpack.c.bf16 %v170_v29, %v169_v28 }
  0x29   :  { %432 = vmatpush3.bf16.msra.mxu0 %v431_v6  ;;  %v153_v36 = vld [vmem:[#allocation2 + $0x170] sm:$0xff]  ;;  %v154_v37 = vld [vmem:[#allocation2 + $0x178] sm:$0xff]  ;;  %v443_v38 = vpack.c.bf16 %v122_v34, %v121_v33 }
  0x2a   :  { %464 = vmatpush3.bf16.msra.mxu1 %v463_v7  ;;  %434 = vmatprep.subr.bf16.mxu0 %v433_v8  ;;  %v475_v39 = vpack.c.bf16 %v154_v37, %v153_v36 }
  0x2b   :  { %466 = vmatprep.subr.bf16.mxu1 %v465_v12 }
  0x2d   :  { %436 = vmatpush3.bf16.msra.mxu0 %v435_v18 }
  0x2e   :  { %468 = vmatpush3.bf16.msra.mxu1 %v467_v19  ;;  %438 = vmatprep.subr.bf16.mxu0 %v437_v20 }
  0x2f   :  { %470 = vmatprep.subr.bf16.mxu1 %v469_v24 }
  0x31   :  { %440 = vmatpush3.bf16.msra.mxu0 %v439_v30 }
  0x32   :  { %472 = vmatpush3.bf16.msra.mxu1 %v471_v31  ;;  %442 = vmatprep.subr.bf16.mxu0 %v441_v32 }
  0x33   :  { %474 = vmatprep.subr.bf16.mxu1 %v473_v35 }
  0x35   :  { %444 = vmatpush3.bf16.msra.mxu0 %v443_v38 }
  0x36   :  { %476 = vmatpush3.bf16.msra.mxu1 %v475_v39 }
  0x94   :  { %v34_v45 = vpop.permute.xlu0 %33 }
  0x95   :  { %vm35_vm0 = vcmp.eq.s32.totalorder %v28_v41, %v34_v45  ;;  %vm36_vm1 = vcmp.eq.s32.totalorder %v29_v42, %v34_v45  ;;  %vm37_vm2 = vcmp.eq.s32.totalorder %v30_v43, %v34_v45  ;;  %vm38_vm3 = vcmp.eq.s32.totalorder %v31_v44, %v34_v45  ;;  %v70_v46 = vpop.permute.xlu1 %69 }
  0x96   :  { %vm71_vm4 = vcmp.eq.s32.totalorder %v28_v41, %v70_v46  ;;  %vm73_vm5 = vcmp.eq.s32.totalorder %v30_v43, %v70_v46  ;;  %vm72_vm6 = vcmp.eq.s32.totalorder %v29_v42, %v70_v46  ;;  %v327_v48 = vsel %vm35_vm0, 1.0, %v546_v47 }
  0x97   :  { %v329_v49 = vsel %vm37_vm2, 1.0, %v546_v47  ;;  %v328_v50 = vsel %vm36_vm1, 1.0, %v546_v47  ;;  %v330_v51 = vsel %vm38_vm3, 1.0, %v546_v47  ;;  %v335_v52 = vsel %vm71_vm4, 1.0, %v546_v47 }
  0x98   :  { %v337_v53 = vsel %vm73_vm5, 1.0, %v546_v47  ;;  %v336_v55 = vsel %vm72_vm6, 1.0, %v546_v47  ;;  %vm74_vm7 = vcmp.eq.s32.totalorder %v31_v44, %v70_v46 }
  0x99   :  { %v50_v54 = vpop.permute.xlu0 %49  ;;  %v338_v6 = vsel %vm74_vm7, 1.0, %v546_v47 }
  0x9a   :  { %vm51_vm8 = vcmp.eq.s32.totalorder %v28_v41, %v50_v54  ;;  %vm52_vm9 = vcmp.eq.s32.totalorder %v29_v42, %v50_v54  ;;  %vm53_vm10 = vcmp.eq.s32.totalorder %v30_v43, %v50_v54  ;;  %vm54_vm11 = vcmp.eq.s32.totalorder %v31_v44, %v50_v54 }
  0x9b   :  { %v331_v56 = vsel %vm51_vm8, 1.0, %v546_v47  ;;  %v332_v57 = vsel %vm52_vm9, 1.0, %v546_v47  ;;  %v333_v58 = vsel %vm53_vm10, 1.0, %v546_v47  ;;  %v334_v59 = vsel %vm54_vm11, 1.0, %v546_v47  ;;  %v90_v60 = vpop.permute.xlu1 %89 }
  0x9c   :  { %v63_v61 = vadd.f32 %v331_v56, %v327_v48  ;;  %v65_v62 = vadd.f32 %v333_v58, %v329_v49  ;;  %vm91_vm12 = vcmp.eq.s32.totalorder %v28_v41, %v90_v60  ;;  %vm93_vm13 = vcmp.eq.s32.totalorder %v30_v43, %v90_v60 }
  0x9d   :  { %v339_v63 = vsel %vm91_vm12, 1.0, %v546_v47  ;;  %v341_v0 = vsel %vm93_vm13, 1.0, %v546_v47  ;;  %v64_v1 = vadd.f32 %v332_v57, %v328_v50  ;;  %vm92_vm14 = vcmp.eq.s32.totalorder %v29_v42, %v90_v60 }
  0x9e   :  { %v340_v2 = vsel %vm92_vm14, 1.0, %v546_v47  ;;  %v66_v3 = vadd.f32 %v334_v59, %v330_v51  ;;  %vm94_vm15 = vcmp.eq.s32.totalorder %v31_v44, %v90_v60  ;;  %v83_v4 = vadd.f32 %v335_v52, %v63_v61 }
  0x9f   :  { %v84_v5 = vadd.f32 %v336_v55, %v64_v1  ;;  %v342_v7 = vsel %vm94_vm15, 1.0, %v546_v47  ;;  %v85_v8 = vadd.f32 %v337_v53, %v65_v62 }
  0xa0   :  { %v86_v9 = vadd.f32 %v338_v6, %v66_v3  ;;  %v103_v10 = vadd.f32 %v339_v63, %v83_v4 }
  0xa1   :  { %v104_v11 = vadd.f32 %v340_v2, %v84_v5  ;;  %v105_v12 = vadd.f32 %v341_v0, %v85_v8 }
  0xa2   :  { %v106_v13 = vadd.f32 %v342_v7, %v86_v9 }
  0xa3   :  { %235 = vmatprep.mubr.f32.mxu0 %v104_v11 }
  0xa4   :  { %305 = vmatprep.mubr.f32.mxu1 %v106_v13  ;;  %236 = vmatmul.mubr.f32.vlgmr.msra.gmra.mrb[0].mxu0 %v103_v10 }
  0xa5   :  { %306 = vmatmul.mubr.f32.vlgmr.msra.gmra.mrb[0].mxu1 %v105_v12 }
 0x177   :  { %v375_v14 = vpop.f32.mrb[0].mxu0 }
 0x178   :  { %v410_v15 = vpop.f32.mrb[0].mxu1  ;;  %v376_v16 = vpop.f32.mrb[1].mxu0 }
 0x179   :  { %v377_v17 = vadd.f32 %v376_v16, %v375_v14  ;;  %v411_v18 = vpop.f32.mrb[1].mxu1 }
 0x17a   :  { %v412_v19 = vadd.f32 %v411_v18, %v410_v15 }
 0x17c   :  { %v308_v20 = vadd.f32 %v412_v19, %v377_v17 }
 0x17e   :  { %311 = vst [vmem:[#allocation5] sm:$0xff] %v308_v20 }
 0x17f   :  { %524 = shalt.err (!%p521_p12)
}
 0x180   :  { %s525_s28 = scalar_lea.hbm %s593_s2, 128 }
 0x181   :  { %p526_p13 = scmp.ne.s32.totalorder %s593_s2, %s525_s28  ;;  %p529_p0 = scmp.lt.u32.totalorder %s525_s28, %s593_s2 }
 0x183   :  { %p531_p1 = pnand %p529_p0, %p526_p13 }
 0x185   :  { %534 = shalt.err (!%p531_p1)
}
 0x186   :  { %321 = dma.vmem_to_hbm [thread:$0]  %s319_s1, 128, %s593_s2, [#allocation4]  }
 0x187   :  { %537 = dma.done.wait [#allocation4], 128  }
 0x188   :  { %538 = vsyncadd [#allocation4], 4294967168 }
 0x189   :  { %325 = vsyncpa [#allocation3], 1 }
 0x18a   :  { %326 = vsyncpa [#allocation4], 1 }

</bundles_post_ra>
